<compile_context>
chip_gen: v6e
topology: v6e:2x2x1
jax: 0.10.0
libtpu: 0.0.40
codegen_flags: <defaults>
</compile_context>

<pallas_src>
import functools

import jax
import jax.numpy as jnp
from jax.experimental import pallas as pl
from jax.experimental.pallas import tpu as pltpu


HIDDEN_PAD = 128  # lane-align the 20/10/20 hidden dims once, at init


def _sigmoid(z):
    # explicit logistic: exp lowers to the EUP (its own bundle slot)
    return 1.0 / (1.0 + jnp.exp(-z))


def sae_kernel(x_ref,
               w1_ref, b1_ref,
               w2_ref, b2_ref,
               w3_ref, b3_ref,
               w4_ref, b4_ref,
               o_ref):
    x = x_ref[...]

    h1 = _sigmoid(jnp.dot(x, w1_ref[...], preferred_element_type=jnp.float32)
                  + b1_ref[...])
    h2 = _sigmoid(jnp.dot(h1, w2_ref[...], preferred_element_type=jnp.float32)
                  + b2_ref[...])
    h3 = _sigmoid(jnp.dot(h2, w3_ref[...], preferred_element_type=jnp.float32)
                  + b3_ref[...])
    out = (jnp.dot(h3, w4_ref[...], preferred_element_type=jnp.float32)
           + b4_ref[...])

    o_ref[...] = out.astype(o_ref.dtype)


def _round_up(x, m):
    return (x + m - 1) // m * m


def _pick_batch_tile(B, tile_b):
    """Pick an 8-aligned, balanced batch tile.

    * >= 2 grid steps whenever B >= 16 so v7x's two TensorCores both get work
      (the batch grid axis is marked "parallel").
    * Tiles are equalized (cdiv) so the last (ragged) tile never carries more
      than ~8 rows of clipped work — no up-to-2x over-padding.
    * Single-step case uses block == full batch dim (exempt from the 8-row
      divisibility rule), so tiny batches need no padding either.
    """
    n_tiles = pl.cdiv(B, tile_b)
    if n_tiles == 1 and B >= 16:
        n_tiles = 2                      # let v7x megacore split the batch
    if n_tiles == 1:
        return B, 1                      # block == full dim, grid of one
    tile = _round_up(pl.cdiv(B, n_tiles), 8)
    return tile, pl.cdiv(B, tile)


def sae_forward(x, padded_params, *, tile_b=512):
    """x: (B, nb_movies) float32.  padded_params: output of pad_params(...).

    No per-call padding or slicing: feature dim rides the full-dim BlockSpec
    exception, and a ragged final batch tile is clipped by the pipeline
    (rows are independent; out-of-bounds output rows are never written).
    """
    B, nb_movies = x.shape
    p = padded_params
    tile, grid_b = _pick_batch_tile(B, tile_b)

    def resident(a):
        # Tiny weights/biases: constant block index -> fetched once, stay
        # VMEM-resident across all grid steps.
        return pl.BlockSpec(a.shape, lambda i: (0, 0))

    return pl.pallas_call(
        sae_kernel,
        out_shape=jax.ShapeDtypeStruct((B, nb_movies), x.dtype),
        grid_spec=pltpu.PrefetchScalarGridSpec(
            num_scalar_prefetch=0,
            grid=(grid_b,),
            in_specs=[
                pl.BlockSpec((tile, nb_movies), lambda i: (i, 0)),  # x stream
                resident(p["w1"]), resident(p["b1"]),
                resident(p["w2"]), resident(p["b2"]),
                resident(p["w3"]), resident(p["b3"]),
                resident(p["w4"]), resident(p["b4"]),
            ],
            out_specs=pl.BlockSpec((tile, nb_movies), lambda i: (i, 0)),
        ),
        compiler_params=pltpu.CompilerParams(
            dimension_semantics=("parallel",),
            # 48 MiB fits every generation (v7x physical VMEM is 64 MiB) and
            # comfortably holds double-buffered 512-row f32 tiles + weights at
            # nb_movies ~ 1792.  v5e/v6e (128 MiB) could raise this for bigger
            # tiles, but 512 rows already sits near the HBM roofline.
            vmem_limit_bytes=48 * 1024 * 1024,
        ),
    )(x, p["w1"], p["b1"], p["w2"], p["b2"],
      p["w3"], p["b3"], p["w4"], p["b4"])


def init_params(key, nb_movies):
    """Deterministic logical params.  Weights stored as (in, out) = torch W.T,
    matching nn.Linear's default uniform(-1/sqrt(fan_in), 1/sqrt(fan_in))."""
    dims = [(nb_movies, 20), (20, 10), (10, 20), (20, nb_movies)]
    params = {}
    for idx, (fan_in, fan_out) in enumerate(dims, start=1):
        key, kw, kb = jax.random.split(key, 3)
        bound = 1.0 / jnp.sqrt(fan_in)
        params[f"w{idx}"] = jax.random.uniform(
            kw, (fan_in, fan_out), jnp.float32, -bound, bound)
        params[f"b{idx}"] = jax.random.uniform(
            kb, (1, fan_out), jnp.float32, -bound, bound)
    return params


def pad_params(params, hidden_pad=HIDDEN_PAD):
    """One-time lane alignment of the hidden dims (20/10/20 -> 128).

    Exact: padded hidden activation columns evaluate to sigmoid(0) = 0.5, but
    the corresponding *rows* of the next layer's weight are zero-padded, so
    they contribute nothing.  Runs once at init, never in the forward path.
    """
    def pad2(a, rows, cols):
        return jnp.pad(a, ((0, rows - a.shape[0]), (0, cols - a.shape[1])))

    nb_movies = params["w1"].shape[0]
    h = hidden_pad
    return {
        "w1": pad2(params["w1"], nb_movies, h),
        "b1": pad2(params["b1"], 1, h),
        "w2": pad2(params["w2"], h, h),
        "b2": pad2(params["b2"], 1, h),
        "w3": pad2(params["w3"], h, h),
        "b3": pad2(params["b3"], 1, h),
        "w4": pad2(params["w4"], h, nb_movies),
        "b4": params["b4"],
    }


def sae_reference(x, p):
    """Pure-JAX reference on the logical (unpadded) params."""
    h = jax.nn.sigmoid(x @ p["w1"] + p["b1"])
    h = jax.nn.sigmoid(h @ p["w2"] + p["b2"])
    h = jax.nn.sigmoid(h @ p["w3"] + p["b3"])
    return h @ p["w4"] + p["b4"]


if __name__ == "__main__":
    # Small synthetic stand-in for nb_movies = int(max(...)) over the ratings
    # data.  Deliberately NOT a multiple of 128 so the full-dim lane path is
    # exercised.
    nb_movies = 50
    key = jax.random.PRNGKey(0)
    key, kp = jax.random.split(key)

    params = init_params(kp, nb_movies)     # logical weights (for reference)
    padded = pad_params(params)             # one-time pad, outside hot path

    fwd = functools.partial(sae_forward, tile_b=512)

    # Case 1: tiny batch -> single full-batch block (grid == 1, no padding).
    batch = 12
    key, kx = jax.random.split(key)
    x = jax.random.uniform(kx, (batch, nb_movies), jnp.float32, 0.0, 5.0)
    out = jax.block_until_ready(fwd(x, padded))
    ref = sae_reference(x, params)
    assert out.shape == (batch, nb_movies)
    assert jnp.allclose(out, ref, atol=1e-4, rtol=1e-4)

    # Case 2: batch forcing a 2-step grid with a ragged (clipped) last tile —
    # exercises the no-padding streaming path and the v7x megacore split.
    batch2 = 20
    key, kx2 = jax.random.split(key)
    x2 = jax.random.uniform(kx2, (batch2, nb_movies), jnp.float32, 0.0, 5.0)
    out2 = jax.block_until_ready(fwd(x2, padded))
    ref2 = sae_reference(x2, params)
    assert out2.shape == (batch2, nb_movies)
    assert jnp.allclose(out2, ref2, atol=1e-4, rtol=1e-4)

    print("KERNEL_OK")
</pallas_src>

<mosaic_0001>
module attributes {stable_mosaic.version = 11 : i64} {
  func.func @sae_kernel(%arg0: i32, %arg1: memref<12x50xf32, #tpu.memory_space<vmem>>, %arg2: memref<50x128xf32, #tpu.memory_space<vmem>>, %arg3: memref<1x128xf32, #tpu.memory_space<vmem>>, %arg4: memref<128x128xf32, #tpu.memory_space<vmem>>, %arg5: memref<1x128xf32, #tpu.memory_space<vmem>>, %arg6: memref<128x128xf32, #tpu.memory_space<vmem>>, %arg7: memref<1x128xf32, #tpu.memory_space<vmem>>, %arg8: memref<128x50xf32, #tpu.memory_space<vmem>>, %arg9: memref<1x50xf32, #tpu.memory_space<vmem>>, %arg10: memref<12x50xf32, #tpu.memory_space<vmem>>) attributes {dimension_semantics = [#tpu.dimension_semantics<parallel>], iteration_bounds = array<i64: 1>, scalar_prefetch = 0 : i64, scratch_operands = 0 : i64, tpu.core_type = #tpu.core_type<tc>, window_params = [{transform_indices = @transform_0, window_bounds = array<i64: 12, 50>}, {pipeline_mode = #tpu.pipeline_mode<synchronous>, transform_indices = @transform_1, window_bounds = array<i64: 50, 128>}, {pipeline_mode = #tpu.pipeline_mode<synchronous>, transform_indices = @transform_2, window_bounds = array<i64: 1, 128>}, {pipeline_mode = #tpu.pipeline_mode<synchronous>, transform_indices = @transform_3, window_bounds = array<i64: 128, 128>}, {pipeline_mode = #tpu.pipeline_mode<synchronous>, transform_indices = @transform_4, window_bounds = array<i64: 1, 128>}, {pipeline_mode = #tpu.pipeline_mode<synchronous>, transform_indices = @transform_5, window_bounds = array<i64: 128, 128>}, {pipeline_mode = #tpu.pipeline_mode<synchronous>, transform_indices = @transform_6, window_bounds = array<i64: 1, 128>}, {pipeline_mode = #tpu.pipeline_mode<synchronous>, transform_indices = @transform_7, window_bounds = array<i64: 128, 50>}, {pipeline_mode = #tpu.pipeline_mode<synchronous>, transform_indices = @transform_8, window_bounds = array<i64: 1, 50>}, {transform_indices = @transform_9, window_bounds = array<i64: 12, 50>}]} {
    %c0 = arith.constant 0 : index
    %c0_0 = arith.constant 0 : index
    %0 = vector.load %arg1[%c0, %c0_0] : memref<12x50xf32, #tpu.memory_space<vmem>>, vector<12x50xf32>
    %c0_1 = arith.constant 0 : index
    %c0_2 = arith.constant 0 : index
    %1 = vector.load %arg2[%c0_1, %c0_2] : memref<50x128xf32, #tpu.memory_space<vmem>>, vector<50x128xf32>
    %cst = arith.constant dense<0.000000e+00> : vector<12x128xf32>
    %2 = tpu.matmul %0, %1, %cst {dimension_numbers = #tpu.dot_dimension_numbers<[1], [0], [0], [1], [0, 0, 1, 1], [], []>} : vector<12x50xf32>, vector<50x128xf32>, vector<12x128xf32> -> vector<12x128xf32>
    %c0_3 = arith.constant 0 : index
    %c0_4 = arith.constant 0 : index
    %3 = vector.load %arg3[%c0_3, %c0_4] : memref<1x128xf32, #tpu.memory_space<vmem>>, vector<1x128xf32>
    %4 = vector.broadcast %3 : vector<1x128xf32> to vector<12x128xf32>
    %5 = arith.addf %2, %4 : vector<12x128xf32>
    %cst_5 = arith.constant 0.000000e+00 : f32
    %6 = vector.broadcast %cst_5 : f32 to vector<12x128xf32>
    %7 = arith.subf %6, %5 : vector<12x128xf32>
    %8 = math.exp %7 : vector<12x128xf32>
    %cst_6 = arith.constant 1.000000e+00 : f32
    %9 = vector.broadcast %cst_6 : f32 to vector<12x128xf32>
    %10 = arith.addf %9, %8 : vector<12x128xf32>
    %cst_7 = arith.constant 1.000000e+00 : f32
    %11 = vector.broadcast %cst_7 : f32 to vector<12x128xf32>
    %12 = arith.divf %11, %10 : vector<12x128xf32>
    %c0_8 = arith.constant 0 : index
    %c0_9 = arith.constant 0 : index
    %13 = vector.load %arg4[%c0_8, %c0_9] : memref<128x128xf32, #tpu.memory_space<vmem>>, vector<128x128xf32>
    %cst_10 = arith.constant dense<0.000000e+00> : vector<12x128xf32>
    %14 = tpu.matmul %12, %13, %cst_10 {dimension_numbers = #tpu.dot_dimension_numbers<[1], [0], [0], [1], [0, 0, 1, 1], [], []>} : vector<12x128xf32>, vector<128x128xf32>, vector<12x128xf32> -> vector<12x128xf32>
    %c0_11 = arith.constant 0 : index
    %c0_12 = arith.constant 0 : index
    %15 = vector.load %arg5[%c0_11, %c0_12] : memref<1x128xf32, #tpu.memory_space<vmem>>, vector<1x128xf32>
    %16 = vector.broadcast %15 : vector<1x128xf32> to vector<12x128xf32>
    %17 = arith.addf %14, %16 : vector<12x128xf32>
    %cst_13 = arith.constant 0.000000e+00 : f32
    %18 = vector.broadcast %cst_13 : f32 to vector<12x128xf32>
    %19 = arith.subf %18, %17 : vector<12x128xf32>
    %20 = math.exp %19 : vector<12x128xf32>
    %cst_14 = arith.constant 1.000000e+00 : f32
    %21 = vector.broadcast %cst_14 : f32 to vector<12x128xf32>
    %22 = arith.addf %21, %20 : vector<12x128xf32>
    %cst_15 = arith.constant 1.000000e+00 : f32
    %23 = vector.broadcast %cst_15 : f32 to vector<12x128xf32>
    %24 = arith.divf %23, %22 : vector<12x128xf32>
    %c0_16 = arith.constant 0 : index
    %c0_17 = arith.constant 0 : index
    %25 = vector.load %arg6[%c0_16, %c0_17] : memref<128x128xf32, #tpu.memory_space<vmem>>, vector<128x128xf32>
    %cst_18 = arith.constant dense<0.000000e+00> : vector<12x128xf32>
    %26 = tpu.matmul %24, %25, %cst_18 {dimension_numbers = #tpu.dot_dimension_numbers<[1], [0], [0], [1], [0, 0, 1, 1], [], []>} : vector<12x128xf32>, vector<128x128xf32>, vector<12x128xf32> -> vector<12x128xf32>
    %c0_19 = arith.constant 0 : index
    %c0_20 = arith.constant 0 : index
    %27 = vector.load %arg7[%c0_19, %c0_20] : memref<1x128xf32, #tpu.memory_space<vmem>>, vector<1x128xf32>
    %28 = vector.broadcast %27 : vector<1x128xf32> to vector<12x128xf32>
    %29 = arith.addf %26, %28 : vector<12x128xf32>
    %cst_21 = arith.constant 0.000000e+00 : f32
    %30 = vector.broadcast %cst_21 : f32 to vector<12x128xf32>
    %31 = arith.subf %30, %29 : vector<12x128xf32>
    %32 = math.exp %31 : vector<12x128xf32>
    %cst_22 = arith.constant 1.000000e+00 : f32
    %33 = vector.broadcast %cst_22 : f32 to vector<12x128xf32>
    %34 = arith.addf %33, %32 : vector<12x128xf32>
    %cst_23 = arith.constant 1.000000e+00 : f32
    %35 = vector.broadcast %cst_23 : f32 to vector<12x128xf32>
    %36 = arith.divf %35, %34 : vector<12x128xf32>
    %c0_24 = arith.constant 0 : index
    %c0_25 = arith.constant 0 : index
    %37 = vector.load %arg8[%c0_24, %c0_25] : memref<128x50xf32, #tpu.memory_space<vmem>>, vector<128x50xf32>
    %cst_26 = arith.constant dense<0.000000e+00> : vector<12x50xf32>
    %38 = tpu.matmul %36, %37, %cst_26 {dimension_numbers = #tpu.dot_dimension_numbers<[1], [0], [0], [1], [0, 0, 1, 1], [], []>} : vector<12x128xf32>, vector<128x50xf32>, vector<12x50xf32> -> vector<12x50xf32>
    %c0_27 = arith.constant 0 : index
    %c0_28 = arith.constant 0 : index
    %39 = vector.load %arg9[%c0_27, %c0_28] : memref<1x50xf32, #tpu.memory_space<vmem>>, vector<1x50xf32>
    %40 = vector.broadcast %39 : vector<1x50xf32> to vector<12x50xf32>
    %41 = arith.addf %38, %40 : vector<12x50xf32>
    %c0_29 = arith.constant 0 : index
    %c0_30 = arith.constant 0 : index
    %42 = vector.load %arg10[%c0_29, %c0_30] : memref<12x50xf32, #tpu.memory_space<vmem>>, vector<12x50xf32>
    tpu.vector_store %arg10[%c0_29, %c0_30], %41 {strides = array<i32>} : memref<12x50xf32, #tpu.memory_space<vmem>>, vector<12x50xf32>,
    return
  }
  func.func @transform_0(%arg0: i32) -> (i32, i32) {
    %c0_i32 = arith.constant 0 : i32
    %c0_i32_0 = arith.constant 0 : i32
    return %arg0, %c0_i32 : i32, i32
  }
  func.func @transform_1(%arg0: i32) -> (i32, i32) {
    %c0_i32 = arith.constant 0 : i32
    %c0_i32_0 = arith.constant 0 : i32
    %c0_i32_1 = arith.constant 0 : i32
    return %c0_i32, %c0_i32_0 : i32, i32
  }
  func.func @transform_2(%arg0: i32) -> (i32, i32) {
    %c0_i32 = arith.constant 0 : i32
    %c0_i32_0 = arith.constant 0 : i32
    %c0_i32_1 = arith.constant 0 : i32
    return %c0_i32, %c0_i32_0 : i32, i32
  }
  func.func @transform_3(%arg0: i32) -> (i32, i32) {
    %c0_i32 = arith.constant 0 : i32
    %c0_i32_0 = arith.constant 0 : i32
    %c0_i32_1 = arith.constant 0 : i32
    return %c0_i32, %c0_i32_0 : i32, i32
  }
  func.func @transform_4(%arg0: i32) -> (i32, i32) {
    %c0_i32 = arith.constant 0 : i32
    %c0_i32_0 = arith.constant 0 : i32
    %c0_i32_1 = arith.constant 0 : i32
    return %c0_i32, %c0_i32_0 : i32, i32
  }
  func.func @transform_5(%arg0: i32) -> (i32, i32) {
    %c0_i32 = arith.constant 0 : i32
    %c0_i32_0 = arith.constant 0 : i32
    %c0_i32_1 = arith.constant 0 : i32
    return %c0_i32, %c0_i32_0 : i32, i32
  }
  func.func @transform_6(%arg0: i32) -> (i32, i32) {
    %c0_i32 = arith.constant 0 : i32
    %c0_i32_0 = arith.constant 0 : i32
    %c0_i32_1 = arith.constant 0 : i32
    return %c0_i32, %c0_i32_0 : i32, i32
  }
  func.func @transform_7(%arg0: i32) -> (i32, i32) {
    %c0_i32 = arith.constant 0 : i32
    %c0_i32_0 = arith.constant 0 : i32
    %c0_i32_1 = arith.constant 0 : i32
    return %c0_i32, %c0_i32_0 : i32, i32
  }
  func.func @transform_8(%arg0: i32) -> (i32, i32) {
    %c0_i32 = arith.constant 0 : i32
    %c0_i32_0 = arith.constant 0 : i32
    %c0_i32_1 = arith.constant 0 : i32
    return %c0_i32, %c0_i32_0 : i32, i32
  }
  func.func @transform_9(%arg0: i32) -> (i32, i32) {
    %c0_i32 = arith.constant 0 : i32
    %c0_i32_0 = arith.constant 0 : i32
    return %arg0, %c0_i32 : i32, i32
  }
}

</mosaic_0001>

<bundles_post_ra>
// kernel: tpu_custom_call.1
= control target key start
LH: loop header
LB: loop body
LE: loop exit
PB: predicated region body
PF: predicated region fallthrough
CT: control target
= control target key end

     0   :  { %14 = vsyncpa [#allocation3], 0  ;;  %s1006_s0 = inlined_call_operand.hbm [shape: f32[12,50], index: 0, kind: input, shape index: {}]   ;;  %s1007_s1 = inlined_call_operand.vmem [shape: f32[50,128], index: 1, kind: input, shape index: {}]   ;;  %s1008_s2 = inlined_call_operand.vmem [shape: f32[1,128], index: 2, kind: input, shape index: {}]   ;;  %s1009_s3 = inlined_call_operand.vmem [shape: f32[128,128], index: 3, kind: input, shape index: {}]   ;;  %s1010_s4 = inlined_call_operand.vmem [shape: f32[1,128], index: 4, kind: input, shape index: {}]   ;;  %s1011_s5 = inlined_call_operand.hbm [shape: f32[128,128], index: 5, kind: input, shape index: {}]   ;;  %s1012_s6 = inlined_call_operand.vmem [shape: f32[1,128], index: 6, kind: input, shape index: {}]   ;;  %s1013_s7 = inlined_call_operand.vmem [shape: f32[128,50], index: 7, kind: input, shape index: {}]   ;;  %s1014_s8 = inlined_call_operand.vmem [shape: f32[1,50], index: 8, kind: input, shape index: {}]   ;;  %s1015_s9 = inlined_call_operand.hbm [shape: f32[12,50], index: 9, kind: output, shape index: {}]  }
   0x1   :  { %15 = vsyncpa [#allocation6], 0 }
   0x2   :  { %16 = vsyncpa [#allocation4], 0  ;;  %s801_s30 = smov [#allocation2]  }
   0x3   :  { %s22_s10 = sshll.u32 %s801_s30, 4  ;;  %s23_s10 = int_to_ptr.vmem [resolvable:$true] %s22_s10 }
   0x4   :  { %s743_s11 = scalar_lea.vmem %s23_s10, 256  ;;  %p748_p1 = scmp.lt.s32.totalorder %s23_s10, %s23_s10 }
   0x5   :  { %p744_p0 = scmp.ne.s32.totalorder %s23_s10, %s743_s11  ;;  %p749_p2 = scmp.lt.s32.totalorder %s743_s11, %s743_s11 }
   0x7   :  { %p750_p3 = por %p749_p2, %p748_p1 }
   0x9   :  { %p751_p4 = pnand %p750_p3, %p744_p0 }
   0xb   :  { %754 = shalt.err (!%p751_p4)
}
   0xc   :  { %s802_s12 = smov 128   ;;  %s803_s13 = smov 8  }
   0xd   :  { %28 = dma.hbm_to_vmem [thread:$0]  %s1006_s0, 256, %s23_s10, [#allocation3], %s802_s12, %s802_s12, %s803_s13  }
   0xe   :  { %s804_s16 = smov [#allocation5]  }
   0xf   :  { %s42_s17 = sshll.u32 %s804_s16, 4  ;;  %s43_s17 = int_to_ptr.vmem [resolvable:$true] %s42_s17 }
  0x10   :  { %s763_s18 = scalar_lea.vmem %s43_s17, 2048  ;;  %p768_p6 = scmp.lt.s32.totalorder %s43_s17, %s43_s17 }
  0x11   :  { %p764_p5 = scmp.ne.s32.totalorder %s43_s17, %s763_s18  ;;  %p769_p7 = scmp.lt.s32.totalorder %s763_s18, %s763_s18 }
  0x13   :  { %p770_p8 = por %p769_p7, %p768_p6 }
  0x15   :  { %p771_p9 = pnand %p770_p8, %p764_p5 }
  0x17   :  { %774 = shalt.err (!%p771_p9)
}
  0x18   :  { %48 = dma.hbm_to_vmem [thread:$0]  %s1011_s5, 2048, %s43_s17, [#allocation6], %s802_s12, %s802_s12, %s803_s13  }
  0x19   :  { %795 = dma.done.wait [#allocation3], 256  }
  0x1a   :  { %796 = vsyncadd [#allocation3], 4294967040 }
  0x1b   :  { %797 = dma.done.wait [#allocation6], 2048  }
  0x1c   :  { %798 = vsyncadd [#allocation6], 4294965248  ;;  %vm84_vm0 = vcmask 1041408   ;;  %v69_v0 = vld [vmem:[%s1007_s1 + $0x30] sm:$0x3]  ;;  %v68_v1 = vld [vmem:[%s1007_s1 + $0x28] sm:$0xff] }
  0x1d   :  { %vm77_vm1 = vcmask 408576   ;;  %584 = vmatprep.subr.msk.mxu0 %vm84_vm0, %v69_v0  ;;  %v67_v2 = vld [vmem:[%s1007_s1 + $0x20] sm:$0xff]  ;;  %v66_v4 = vld [vmem:[%s1007_s1 + $0x18] sm:$0xff]  ;;  %v65_v5 = vld [vmem:[%s1007_s1 + $0x10] sm:$0xff]  ;;  %vm494_vm2 = vcmask 404480   ;;  %s805_s10 = smov [#allocation7]  }
  0x1e   :  { %585 = vmatpush3.msk.msra.mxu0 %vm84_vm0, %v69_v0  ;;  %v61_v3 = vld [vmem:[#allocation2] sm:$0xff]  ;;  %v64_v6 = vld [vmem:[%s1007_s1 + $0x8] sm:$0xff]  ;;  %v190_v9 = vld [vmem:[%s1009_s3 + $0x78] sm:$0xff]  ;;  %s501_s11 = sshll.u32 %s805_s10, 4  ;;  %s502_s11 = int_to_ptr.vmem [resolvable:$true] %s501_s11 }
  0x1f   :  { %586 = vmatprep.subr.mxu0 %v68_v1  ;;  %598 = vmatprep.mubr.msk.f32.mxu0 %vm77_vm1, %v61_v3  ;;  %v63_v7 = vld [vmem:[%s1007_s1] sm:$0xff]  ;;  %v62_v8 = vld [vmem:[#allocation2 + $0x8] sm:$0xf]  ;;  %v189_v10 = vld [vmem:[%s1009_s3 + $0x70] sm:$0xff]  ;;  %s775_s14 = scalar_lea.vmem %s502_s11, 256  ;;  %p780_p11 = scmp.lt.s32.totalorder %s502_s11, %s502_s11 }
  0x20   :  { %587 = vmatpush3.msra.mxu0 %v68_v1  ;;  %601 = vmatprep.subr.mxu1 %v190_v9  ;;  %v188_v11 = vld [vmem:[%s1009_s3 + $0x68] sm:$0xff]  ;;  %v187_v12 = vld [vmem:[%s1009_s3 + $0x60] sm:$0xff]  ;;  %v186_v13 = vld [vmem:[%s1009_s3 + $0x58] sm:$0xff]  ;;  %p776_p10 = scmp.ne.s32.totalorder %s502_s11, %s775_s14  ;;  %p781_p12 = scmp.lt.s32.totalorder %s775_s14, %s775_s14 }
  0x21   :  { %588 = vmatprep.subr.mxu0 %v67_v2  ;;  %602 = vmatpush3.msra.mxu1 %v190_v9  ;;  %v185_v14 = vld [vmem:[%s1009_s3 + $0x50] sm:$0xff]  ;;  %v184_v15 = vld [vmem:[%s1009_s3 + $0x48] sm:$0xff]  ;;  %v183_v16 = vld [vmem:[%s1009_s3 + $0x40] sm:$0xff] }
  0x22   :  { %589 = vmatpush3.msra.mxu0 %v67_v2  ;;  %603 = vmatprep.subr.mxu1 %v189_v10  ;;  %v182_v17 = vld [vmem:[%s1009_s3 + $0x38] sm:$0xff]  ;;  %v181_v18 = vld [vmem:[%s1009_s3 + $0x30] sm:$0xff]  ;;  %v180_v19 = vld [vmem:[%s1009_s3 + $0x28] sm:$0xff]  ;;  %p782_p13 = por %p781_p12, %p780_p11 }
  0x23   :  { %590 = vmatprep.subr.mxu0 %v66_v4  ;;  %604 = vmatpush3.msra.mxu1 %v189_v10  ;;  %v179_v20 = vld [vmem:[%s1009_s3 + $0x20] sm:$0xff]  ;;  %v178_v21 = vld [vmem:[%s1009_s3 + $0x18] sm:$0xff]  ;;  %v177_v22 = vld [vmem:[%s1009_s3 + $0x10] sm:$0xff] }
  0x24   :  { %591 = vmatpush3.msra.mxu0 %v66_v4  ;;  %605 = vmatprep.subr.mxu1 %v188_v11  ;;  %v176_v23 = vld [vmem:[%s1009_s3 + $0x8] sm:$0xff]  ;;  %v175_v24 = vld [vmem:[%s1009_s3] sm:$0xff]  ;;  %v298_v42 = vld [vmem:[#allocation5 + $0x68] sm:$0xff]  ;;  %p783_p0 = pnand %p782_p13, %p776_p10 }
  0x25   :  { %592 = vmatprep.subr.mxu0 %v65_v5  ;;  %606 = vmatpush3.msra.mxu1 %v188_v11  ;;  %v514_v25 = vld [vmem:[%s1008_s2] ss:$0 sm:$0xff]  ;;  %v300_v40 = vld [vmem:[#allocation5 + $0x78] sm:$0xff]  ;;  %v297_v43 = vld [vmem:[#allocation5 + $0x60] sm:$0xff] }
  0x26   :  { %593 = vmatpush3.msra.mxu0 %v65_v5  ;;  %607 = vmatprep.subr.mxu1 %v187_v12  ;;  %v299_v41 = vld [vmem:[#allocation5 + $0x70] sm:$0xff]  ;;  %v296_v44 = vld [vmem:[#allocation5 + $0x58] sm:$0xff]  ;;  %v294_v46 = vld [vmem:[#allocation5 + $0x48] sm:$0xff] }
  0x27   :  { %594 = vmatprep.subr.mxu0 %v64_v6  ;;  %608 = vmatpush3.msra.mxu1 %v187_v12  ;;  %v295_v45 = vld [vmem:[#allocation5 + $0x50] sm:$0xff]  ;;  %v293_v47 = vld [vmem:[#allocation5 + $0x40] sm:$0xff]  ;;  %v292_v48 = vld [vmem:[#allocation5 + $0x38] sm:$0xff] }
  0x28   :  { %595 = vmatpush3.msra.mxu0 %v64_v6  ;;  %609 = vmatprep.subr.mxu1 %v186_v13  ;;  %v291_v49 = vld [vmem:[#allocation5 + $0x30] sm:$0xff]  ;;  %v290_v50 = vld [vmem:[#allocation5 + $0x28] sm:$0xff]  ;;  %v289_v51 = vld [vmem:[#allocation5 + $0x20] sm:$0xff] }
  0x29   :  { %596 = vmatprep.subr.mxu0 %v63_v7  ;;  %610 = vmatpush3.msra.mxu1 %v186_v13  ;;  %v288_v52 = vld [vmem:[#allocation5 + $0x18] sm:$0xff]  ;;  %v287_v53 = vld [vmem:[#allocation5 + $0x10] sm:$0xff]  ;;  %v286_v54 = vld [vmem:[#allocation5 + $0x8] sm:$0xff] }
  0x2a   :  { %597 = vmatpush3.msra.mxu0 %v63_v7  ;;  %611 = vmatprep.subr.mxu1 %v185_v14  ;;  %v285_v55 = vld [vmem:[#allocation5] sm:$0xff]  ;;  %v518_v56 = vld [vmem:[%s1010_s4] ss:$0 sm:$0xff]  ;;  %v410_v7 = vld [vmem:[%s1013_s7 + $0x78] sm:$0xff] }
  0x2b   :  { %599 = vmatmul.mubr.msk.f32.vlgmr.msra.gmra.mxu0 %vm77_vm1, %v62_v8  ;;  %612 = vmatpush3.msra.mxu1 %v185_v14  ;;  %v409_v8 = vld [vmem:[%s1013_s7 + $0x70] sm:$0xff]  ;;  %v408_v9 = vld [vmem:[%s1013_s7 + $0x68] sm:$0xff]  ;;  %v407_v10 = vld [vmem:[%s1013_s7 + $0x60] sm:$0xff] }
  0x2c   :  { %613 = vmatprep.subr.mxu1 %v184_v15  ;;  %636 = vmatprep.subr.mxu0 %v300_v40  ;;  %v406_v11 = vld [vmem:[%s1013_s7 + $0x58] sm:$0xff]  ;;  %v405_v12 = vld [vmem:[%s1013_s7 + $0x50] sm:$0xff]  ;;  %v404_v13 = vld [vmem:[%s1013_s7 + $0x48] sm:$0xff] }
  0x2d   :  { %614 = vmatpush3.msra.mxu1 %v184_v15  ;;  %637 = vmatpush3.msra.mxu0 %v300_v40  ;;  %v403_v14 = vld [vmem:[%s1013_s7 + $0x40] sm:$0xff]  ;;  %v402_v15 = vld [vmem:[%s1013_s7 + $0x38] sm:$0xff] }
  0x2e   :  { %615 = vmatprep.subr.mxu1 %v183_v16  ;;  %638 = vmatprep.subr.mxu0 %v299_v41 }
  0x2f   :  { %616 = vmatpush3.msra.mxu1 %v183_v16  ;;  %639 = vmatpush3.msra.mxu0 %v299_v41  ;;  %v401_v16 = vld [vmem:[%s1013_s7 + $0x30] sm:$0xff] }
  0x30   :  { %617 = vmatprep.subr.mxu1 %v182_v17  ;;  %640 = vmatprep.subr.mxu0 %v298_v42 }
  0x31   :  { %618 = vmatpush3.msra.mxu1 %v182_v17  ;;  %641 = vmatpush3.msra.mxu0 %v298_v42  ;;  %v400_v17 = vld [vmem:[%s1013_s7 + $0x28] sm:$0xff] }
  0x32   :  { %619 = vmatprep.subr.mxu1 %v181_v18  ;;  %642 = vmatprep.subr.mxu0 %v297_v43 }
  0x33   :  { %620 = vmatpush3.msra.mxu1 %v181_v18  ;;  %643 = vmatpush3.msra.mxu0 %v297_v43  ;;  %v399_v18 = vld [vmem:[%s1013_s7 + $0x20] sm:$0xff] }
  0x34   :  { %621 = vmatprep.subr.mxu1 %v180_v19  ;;  %644 = vmatprep.subr.mxu0 %v296_v44 }
  0x35   :  { %622 = vmatpush3.msra.mxu1 %v180_v19  ;;  %645 = vmatpush3.msra.mxu0 %v296_v44  ;;  %v398_v19 = vld [vmem:[%s1013_s7 + $0x18] sm:$0xff] }
  0x36   :  { %623 = vmatprep.subr.mxu1 %v179_v20  ;;  %646 = vmatprep.subr.mxu0 %v295_v45 }
  0x37   :  { %624 = vmatpush3.msra.mxu1 %v179_v20  ;;  %647 = vmatpush3.msra.mxu0 %v295_v45  ;;  %v397_v20 = vld [vmem:[%s1013_s7 + $0x10] sm:$0xff] }
  0x38   :  { %625 = vmatprep.subr.mxu1 %v178_v21  ;;  %648 = vmatprep.subr.mxu0 %v294_v46 }
  0x39   :  { %626 = vmatpush3.msra.mxu1 %v178_v21  ;;  %649 = vmatpush3.msra.mxu0 %v294_v46  ;;  %v396_v21 = vld [vmem:[%s1013_s7 + $0x8] sm:$0xff] }
  0x3a   :  { %627 = vmatprep.subr.mxu1 %v177_v22  ;;  %650 = vmatprep.subr.mxu0 %v293_v47 }
  0x3b   :  { %628 = vmatpush3.msra.mxu1 %v177_v22  ;;  %651 = vmatpush3.msra.mxu0 %v293_v47  ;;  %v395_v22 = vld [vmem:[%s1013_s7] sm:$0xff] }
  0x3c   :  { %629 = vmatprep.subr.mxu1 %v176_v23  ;;  %652 = vmatprep.subr.mxu0 %v292_v48 }
  0x3d   :  { %630 = vmatpush3.msra.mxu1 %v176_v23  ;;  %653 = vmatpush3.msra.mxu0 %v292_v48  ;;  %v519_v23 = vld [vmem:[%s1012_s6] ss:$0 sm:$0xff] }
  0x3e   :  { %631 = vmatprep.subr.mxu1 %v175_v24  ;;  %654 = vmatprep.subr.mxu0 %v291_v49 }
  0x3f   :  { %632 = vmatpush3.msra.mxu1 %v175_v24  ;;  %655 = vmatpush3.msra.mxu0 %v291_v49 }
  0x40   :  { %656 = vmatprep.subr.mxu0 %v290_v50  ;;  %671 = vmatprep.subr.mxu1 %v410_v7 }
  0x41   :  { %657 = vmatpush3.msra.mxu0 %v290_v50 }
  0x42   :  { %658 = vmatprep.subr.mxu0 %v289_v51 }
  0x43   :  { %659 = vmatpush3.msra.mxu0 %v289_v51 }
  0x44   :  { %660 = vmatprep.subr.mxu0 %v288_v52 }
  0x45   :  { %661 = vmatpush3.msra.mxu0 %v288_v52 }
  0x46   :  { %662 = vmatprep.subr.mxu0 %v287_v53 }
  0x47   :  { %663 = vmatpush3.msra.mxu0 %v287_v53 }
  0x48   :  { %664 = vmatprep.subr.mxu0 %v286_v54 }
  0x49   :  { %665 = vmatpush3.msra.mxu0 %v286_v54 }
  0x4a   :  { %666 = vmatprep.subr.mxu0 %v285_v55 }
  0x4b   :  { %667 = vmatpush3.msra.mxu0 %v285_v55 }
  0xeb   :  { %v600_v26 = vpop.f32.mrf.mxu0 }
  0xec   :  { %v160_v27 = vadd.f32 %v600_v26, %v514_v25 }
  0xed   :  { %v154_v28 = vpop.f32.mrf.mxu0 }
  0xee   :  { %v164_v29 = vsub.f32 0.0, %v160_v27  ;;  %v155_v30 = vadd.f32 %v514_v25, %v154_v28 }
  0xf0   :  { %v167_v31 = vmul.f32 1.442695, %v164_v29  ;;  %v163_v32 = vsub.f32 0.0, %v155_v30 }
  0xf2   :  { %711 = vpow2.f32 %v167_v31  ;;  %v165_v33 = vmul.f32 1.442695, %v163_v32 }
  0xf4   :  { %713 = vpow2.f32 %v165_v33 }
  0xff   :  { %v712_v34 = vpop.eup %711 }
 0x100   :  { %v170_v36 = vadd.f32 1.0, %v712_v34 }
 0x101   :  { %v714_v35 = vpop.eup %713 }
 0x102   :  { %v169_v37 = vadd.f32 1.0, %v714_v35 }
 0x104   :  { %715 = vrcp.f32 %v169_v37 }
 0x105   :  { %717 = vrcp.f32 %v170_v36 }
 0x111   :  { %v716_v38 = vpop.eup %715 }
 0x112   :  { %v718_v39 = vpop.eup %717  ;;  %633 = vmatprep.mubr.f32.mxu1 %v716_v38  ;;  %v520_v38 = vld [vmem:[%s1014_s8] ss:$0 sm:$0xff] }
 0x113   :  { %634 = vmatmul.mubr.f32.vlgmr.msra.gmra.mxu1 %v718_v39 }
 0x114   :  { %672 = vmatpush3.msra.mxu1 %v410_v7 }
 0x115   :  { %673 = vmatprep.subr.mxu1 %v409_v8 }
 0x116   :  { %674 = vmatpush3.msra.mxu1 %v409_v8 }
 0x117   :  { %675 = vmatprep.subr.mxu1 %v408_v9 }
 0x118   :  { %676 = vmatpush3.msra.mxu1 %v408_v9 }
 0x119   :  { %677 = vmatprep.subr.mxu1 %v407_v10 }
 0x11a   :  { %678 = vmatpush3.msra.mxu1 %v407_v10 }
 0x11b   :  { %679 = vmatprep.subr.mxu1 %v406_v11 }
 0x11c   :  { %680 = vmatpush3.msra.mxu1 %v406_v11 }
 0x11d   :  { %681 = vmatprep.subr.mxu1 %v405_v12 }
 0x11e   :  { %682 = vmatpush3.msra.mxu1 %v405_v12 }
 0x11f   :  { %683 = vmatprep.subr.mxu1 %v404_v13 }
 0x120   :  { %684 = vmatpush3.msra.mxu1 %v404_v13 }
 0x121   :  { %685 = vmatprep.subr.mxu1 %v403_v14 }
 0x122   :  { %686 = vmatpush3.msra.mxu1 %v403_v14 }
 0x123   :  { %687 = vmatprep.subr.mxu1 %v402_v15 }
 0x124   :  { %688 = vmatpush3.msra.mxu1 %v402_v15 }
 0x125   :  { %689 = vmatprep.subr.mxu1 %v401_v16 }
 0x126   :  { %690 = vmatpush3.msra.mxu1 %v401_v16 }
 0x127   :  { %691 = vmatprep.subr.mxu1 %v400_v17 }
 0x128   :  { %692 = vmatpush3.msra.mxu1 %v400_v17 }
 0x129   :  { %693 = vmatprep.subr.mxu1 %v399_v18 }
 0x12a   :  { %694 = vmatpush3.msra.mxu1 %v399_v18 }
 0x12b   :  { %695 = vmatprep.subr.mxu1 %v398_v19 }
 0x12c   :  { %696 = vmatpush3.msra.mxu1 %v398_v19 }
 0x12d   :  { %697 = vmatprep.subr.mxu1 %v397_v20 }
 0x12e   :  { %698 = vmatpush3.msra.mxu1 %v397_v20 }
 0x12f   :  { %699 = vmatprep.subr.mxu1 %v396_v21 }
 0x130   :  { %700 = vmatpush3.msra.mxu1 %v396_v21 }
 0x131   :  { %701 = vmatprep.subr.mxu1 %v395_v22 }
 0x132   :  { %702 = vmatpush3.msra.mxu1 %v395_v22 }
 0x1d3   :  { %v635_v57 = vpop.f32.mrf.mxu1 }
 0x1d4   :  { %v270_v58 = vadd.f32 %v635_v57, %v518_v56 }
 0x1d5   :  { %v264_v59 = vpop.f32.mrf.mxu1 }
 0x1d6   :  { %v274_v60 = vsub.f32 0.0, %v270_v58  ;;  %v265_v61 = vadd.f32 %v518_v56, %v264_v59 }
 0x1d8   :  { %v277_v62 = vmul.f32 1.442695, %v274_v60  ;;  %v273_v63 = vsub.f32 0.0, %v265_v61 }
 0x1da   :  { %719 = vpow2.f32 %v277_v62  ;;  %v275_v0 = vmul.f32 1.442695, %v273_v63 }
 0x1dc   :  { %721 = vpow2.f32 %v275_v0 }
 0x1e7   :  { %v720_v1 = vpop.eup %719 }
 0x1e8   :  { %v280_v3 = vadd.f32 1.0, %v720_v1 }
 0x1e9   :  { %v722_v2 = vpop.eup %721 }
 0x1ea   :  { %v279_v4 = vadd.f32 1.0, %v722_v2 }
 0x1ec   :  { %723 = vrcp.f32 %v279_v4 }
 0x1ed   :  { %725 = vrcp.f32 %v280_v3 }
 0x1f9   :  { %v724_v5 = vpop.eup %723 }
 0x1fa   :  { %v726_v6 = vpop.eup %725  ;;  %668 = vmatprep.mubr.f32.mxu0 %v724_v5 }
 0x1fb   :  { %669 = vmatmul.mubr.f32.vlgmr.msra.gmra.mxu0 %v726_v6 }
 0x2bb   :  { %v670_v24 = vpop.f32.mrf.mxu0 }
 0x2bc   :  { %v380_v25 = vadd.f32 %v670_v24, %v519_v23 }
 0x2bd   :  { %v374_v26 = vpop.f32.mrf.mxu0 }
 0x2be   :  { %v384_v27 = vsub.f32 0.0, %v380_v25  ;;  %v375_v28 = vadd.f32 %v519_v23, %v374_v26 }
 0x2c0   :  { %v387_v29 = vmul.f32 1.442695, %v384_v27  ;;  %v383_v30 = vsub.f32 0.0, %v375_v28 }
 0x2c2   :  { %727 = vpow2.f32 %v387_v29  ;;  %v385_v31 = vmul.f32 1.442695, %v383_v30 }
 0x2c4   :  { %729 = vpow2.f32 %v385_v31 }
 0x2cf   :  { %v728_v32 = vpop.eup %727 }
 0x2d0   :  { %v390_v34 = vadd.f32 1.0, %v728_v32 }
 0x2d1   :  { %v730_v33 = vpop.eup %729 }
 0x2d2   :  { %v389_v35 = vadd.f32 1.0, %v730_v33 }
 0x2d4   :  { %731 = vrcp.f32 %v389_v35 }
 0x2d5   :  { %733 = vrcp.f32 %v390_v34 }
 0x2e1   :  { %v732_v36 = vpop.eup %731 }
 0x2e2   :  { %v734_v37 = vpop.eup %733  ;;  %703 = vmatprep.mubr.f32.mxu1 %v732_v36 }
 0x2e3   :  { %704 = vmatmul.mubr.f32.vlgmr.msra.gmra.mxu1 %v734_v37 }
 0x3a3   :  { %v705_v39 = vpop.f32.mrf.mxu1 }
 0x3a4   :  { %v490_v40 = vadd.f32 %v705_v39, %v520_v38 }
 0x3a5   :  { %v484_v41 = vpop.f32.mrf.mxu1 }
 0x3a6   :  { %v485_v42 = vadd.f32 %v520_v38, %v484_v41  ;;  %495 = vst.msk [vmem:[#allocation7 + $0x8] sm:$0xf] %vm494_vm2, %v490_v40 }
 0x3a8   :  { %493 = vst.msk [vmem:[#allocation7] sm:$0xff] %vm77_vm1, %v485_v42 }
 0x3a9   :  { %786 = shalt.err (!%p783_p0)
}
 0x3aa   :  { %507 = dma.vmem_to_hbm [thread:$0]  %s502_s11, 256, %s1015_s9, [#allocation4], %s802_s12, %s802_s12, %s803_s13  }
 0x3ab   :  { %799 = dma.done.wait [#allocation4], 256  }
 0x3ac   :  { %800 = vsyncadd [#allocation4], 4294967040 }
 0x3ad   :  { %511 = vsyncpa [#allocation3], 1 }
 0x3ae   :  { %512 = vsyncpa [#allocation6], 1 }
 0x3af   :  { %513 = vsyncpa [#allocation4], 1 }

</bundles_post_ra>
